<compile_context>
chip_gen: v7x
topology: tpu7x:2x2x1
jax: 0.10.0
libtpu: 0.0.40
codegen_flags: <defaults>
</compile_context>

<pallas_src>
import functools
import math

import numpy as np
import jax
import jax.numpy as jnp
from jax.experimental import pallas as pl
from jax.experimental.pallas import tpu as pltpu


def _round_up(x: int, m: int) -> int:
    return ((x + m - 1) // m) * m


def _irfft_kernel(x_ref, b_ref, o_ref):
    # single fused MXU matmul, f32 accumulation
    o_ref[...] = jnp.dot(
        x_ref[...], b_ref[...], preferred_element_type=jnp.float32
    ).astype(o_ref.dtype)


def _build_basis(nlon: int, mmax: int, norm: str):
    """Stacked real-irfft synthesis matrix, shape (2m, nlon).

    Rows [0, m)   :  scale * w_k * cos(2*pi*k*n/nlon)   (multiply Re(x))
    Rows [m, 2m)  : -scale * w_k * sin(2*pi*k*n/nlon)   (multiply Im(x))
    Built in float64 with exact integer phase reduction, then cast to float32.
    """
    kmax = nlon // 2 + 1
    m = min(mmax, kmax)                      # irfft drops modes beyond nlon//2+1
    k = np.arange(m, dtype=np.int64)[:, None]
    n = np.arange(nlon, dtype=np.int64)[None, :]
    phase = (k * n) % nlon                   # exact integer argument reduction
    ang = (2.0 * np.pi / nlon) * phase.astype(np.float64)
    kk = np.arange(m)
    # Hermitian weights: DC (and Nyquist if nlon even) counted once, others doubled.
    single = (kk == 0) | ((nlon % 2 == 0) & (kk == nlon // 2))
    w = np.where(single, 1.0, 2.0)[:, None]
    if norm == "ortho":
        scale = 1.0 / math.sqrt(nlon)
    elif norm in ("backward", None):
        scale = 1.0 / nlon
    elif norm == "forward":
        scale = 1.0
    else:
        raise ValueError(f"unsupported norm: {norm}")
    cr = scale * w * np.cos(ang)             # (m, nlon)
    ci = -scale * w * np.sin(ang)            # (m, nlon); sin rows at DC/Nyquist are 0
    basis = np.concatenate([cr, ci], axis=0).astype(np.float32)   # (2m, nlon)
    return jnp.asarray(basis), m


_VMEM_BUDGET = 40 * 1024 * 1024   # block-footprint budget (safe on v7x 64 MiB VMEM)
_VMEM_CAP = 48 * 1024 * 1024      # never request more than this from the compiler


def _plan_tiles(rows: int, K: int, nlon: int, row_tile: int):
    """Pick (row tile tr, basis column block bn, single_col path?, vmem_limit_bytes)."""
    basis_bytes = K * nlon * 4
    if 2 * basis_bytes <= 24 * 1024 * 1024:
        bn = nlon
        single_col = True
    else:
        single_col = False
        bn = 128
        for cand in (512, 256, 128):
            if 2 * K * cand * 4 <= 24 * 1024 * 1024:
                bn = cand
                break

    def footprint(tr):
        # x tile double-buffered + basis block (2 buffers allocated) + out double-buffered
        return 2 * tr * K * 4 + 2 * K * bn * 4 + 2 * tr * bn * 4

    tr = 8
    for cand in (row_tile, 512, 256, 128, 64, 32, 16, 8):
        if cand % 8 == 0 and cand <= rows and footprint(cand) <= _VMEM_BUDGET:
            tr = cand
            break
    vmem_limit = min(max(int(footprint(tr) * 1.3), 8 * 1024 * 1024), _VMEM_CAP)
    return tr, bn, single_col, vmem_limit


@functools.partial(jax.jit, static_argnums=(2, 3, 4))
def _irfft1_matmul(x, basis, nlon: int, m: int, row_tile: int):
    *lead, _ = x.shape
    K = 2 * m

    # One fused XLA prep op: split real/imag and concat along the contraction axis.
    # (Complex can't enter a Mosaic kernel; lax.bitcast_convert_type rejects complex.)
    xr = jnp.real(x[..., :m]).astype(jnp.float32).reshape(-1, m)
    xi = jnp.imag(x[..., :m]).astype(jnp.float32).reshape(-1, m)
    x2 = jnp.concatenate([xr, xi], axis=-1)          # (R, 2m)
    R = x2.shape[0]
    Rp = _round_up(R, 8)
    if Rp != R:                                      # tiny sublane pad (fuses w/ concat)
        x2 = jnp.pad(x2, ((0, Rp - R), (0, 0)))

    tr, bn, single_col, vmem_limit = _plan_tiles(Rp, K, nlon, row_tile)

    if single_col:
        # Basis is grid-resident: constant index map -> fetched from HBM exactly once.
        grid = (pl.cdiv(Rp, tr),)
        in_specs = [
            pl.BlockSpec((tr, K), lambda i: (i, 0)),
            pl.BlockSpec((K, nlon), lambda i: (0, 0)),
        ]
        out_specs = pl.BlockSpec((tr, nlon), lambda i: (i, 0))
        dims = ("parallel",)                         # v7x: rows sharded across both TCs
        bytes_accessed = 4 * (Rp * K + K * nlon + Rp * nlon)
    else:
        # Huge-nlon fallback: column slabs on the OUTER axis (each basis slab fetched
        # once), rows inner & parallel for megacore sharding.
        n_col = pl.cdiv(nlon, bn)
        grid = (n_col, pl.cdiv(Rp, tr))
        in_specs = [
            pl.BlockSpec((tr, K), lambda j, i: (i, 0)),
            pl.BlockSpec((K, bn), lambda j, i: (0, j)),
        ]
        out_specs = pl.BlockSpec((tr, bn), lambda j, i: (i, j))
        dims = ("arbitrary", "parallel")
        bytes_accessed = 4 * (n_col * Rp * K + K * nlon + Rp * nlon)

    cost = pl.CostEstimate(
        flops=2 * Rp * K * nlon,
        transcendentals=0,
        bytes_accessed=bytes_accessed,
    )

    y = pl.pallas_call(
        _irfft_kernel,
        out_shape=jax.ShapeDtypeStruct((Rp, nlon), jnp.float32),
        grid_spec=pltpu.PrefetchScalarGridSpec(
            num_scalar_prefetch=0,
            grid=grid,
            in_specs=in_specs,
            out_specs=out_specs,
        ),
        compiler_params=pltpu.CompilerParams(
            dimension_semantics=dims,
            vmem_limit_bytes=vmem_limit,
        ),
        cost_estimate=cost,
    )(x2, basis)

    if Rp != R:
        y = y[:R]
    return y.reshape(*lead, nlon)


class InverseRealFFT1:
    """JAX/Pallas equivalent of makani's InverseRealFFT1 (no learnable params)."""

    def __init__(self, nlon: int, lmax=None, mmax=None, row_tile: int = 512):
        self.nlon = nlon
        self.lmax = min(lmax or self.nlon // 2 + 1, self.nlon // 2 + 1)
        self.mmax = min(mmax or self.nlon // 2 + 1, self.lmax)
        self.row_tile = row_tile
        self._basis_cache = {}  # (norm, m) -> (basis, m); built once on host, reused

    def _get_basis(self, M: int, norm: str):
        m = min(M, self.nlon // 2 + 1)
        key = (norm, m)
        if key not in self._basis_cache:
            self._basis_cache[key] = _build_basis(self.nlon, m, norm)
        return self._basis_cache[key]

    def __call__(self, x: jax.Array, norm: str = "ortho") -> jax.Array:
        basis, m = self._get_basis(x.shape[-1], norm)
        return _irfft1_matmul(x, basis, self.nlon, m, self.row_tile)


if __name__ == "__main__":
    # small shapes: batch=2, channels=4, nlat=8, nlon=16 -> mmax = 16//2+1 = 9
    B, C, H, nlon = 2, 4, 8, 16
    mod = InverseRealFFT1(nlon)
    M = mod.mmax  # 9

    key = jax.random.PRNGKey(0)
    kr, ki = jax.random.split(key)
    xr = jax.random.normal(kr, (B, C, H, M), dtype=jnp.float32)
    xi = jax.random.normal(ki, (B, C, H, M), dtype=jnp.float32)
    x = (xr + 1j * xi).astype(jnp.complex64)

    y = mod(x, norm="ortho")
    y = jax.block_until_ready(y)

    # reference check against jnp.fft.irfft (same semantics as torch.fft.irfft)
    y_ref = jnp.fft.irfft(x, n=nlon, axis=-1, norm="ortho").astype(jnp.float32)
    assert y.shape == (B, C, H, nlon)
    assert jnp.allclose(y, y_ref, atol=1e-5, rtol=1e-5), \
        f"max err {jnp.max(jnp.abs(y - y_ref))}"

    print("KERNEL_OK")
</pallas_src>

<mosaic_0001>
module attributes {stable_mosaic.version = 11 : i64} {
  func.func @_irfft_kernel(%arg0: i32, %arg1: memref<64x18xf32, #tpu.memory_space<vmem>>, %arg2: memref<18x16xf32, #tpu.memory_space<vmem>>, %arg3: memref<64x16xf32, #tpu.memory_space<vmem>>) attributes {dimension_semantics = [#tpu.dimension_semantics<parallel>], iteration_bounds = array<i64: 1>, scalar_prefetch = 0 : i64, scratch_operands = 0 : i64, tpu.core_type = #tpu.core_type<tc>, window_params = [{transform_indices = @transform_0, window_bounds = array<i64: 64, 18>}, {pipeline_mode = #tpu.pipeline_mode<synchronous>, transform_indices = @transform_1, window_bounds = array<i64: 18, 16>}, {transform_indices = @transform_2, window_bounds = array<i64: 64, 16>}]} {
    %c0 = arith.constant 0 : index
    %c0_0 = arith.constant 0 : index
    %0 = vector.load %arg1[%c0, %c0_0] : memref<64x18xf32, #tpu.memory_space<vmem>>, vector<64x18xf32>
    %c0_1 = arith.constant 0 : index
    %c0_2 = arith.constant 0 : index
    %1 = vector.load %arg2[%c0_1, %c0_2] : memref<18x16xf32, #tpu.memory_space<vmem>>, vector<18x16xf32>
    %cst = arith.constant dense<0.000000e+00> : vector<64x16xf32>
    %2 = tpu.matmul %0, %1, %cst {dimension_numbers = #tpu.dot_dimension_numbers<[1], [0], [0], [1], [0, 0, 1, 1], [], []>} : vector<64x18xf32>, vector<18x16xf32>, vector<64x16xf32> -> vector<64x16xf32>
    %c0_3 = arith.constant 0 : index
    %c0_4 = arith.constant 0 : index
    %3 = vector.load %arg3[%c0_3, %c0_4] : memref<64x16xf32, #tpu.memory_space<vmem>>, vector<64x16xf32>
    tpu.vector_store %arg3[%c0_3, %c0_4], %2 {strides = array<i32>} : memref<64x16xf32, #tpu.memory_space<vmem>>, vector<64x16xf32>,
    return
  }
  func.func @transform_0(%arg0: i32) -> (i32, i32) {
    %c0_i32 = arith.constant 0 : i32
    %c0_i32_0 = arith.constant 0 : i32
    return %arg0, %c0_i32 : i32, i32
  }
  func.func @transform_1(%arg0: i32) -> (i32, i32) {
    %c0_i32 = arith.constant 0 : i32
    %c0_i32_0 = arith.constant 0 : i32
    %c0_i32_1 = arith.constant 0 : i32
    return %c0_i32, %c0_i32_0 : i32, i32
  }
  func.func @transform_2(%arg0: i32) -> (i32, i32) {
    %c0_i32 = arith.constant 0 : i32
    %c0_i32_0 = arith.constant 0 : i32
    return %arg0, %c0_i32 : i32, i32
  }
}

</mosaic_0001>

<bundles_post_ra>
// kernel: custom-call
= control target key start
LH: loop header
LB: loop body
LE: loop exit
PB: predicated region body
PF: predicated region fallthrough
CT: control target
= control target key end

     0   :  { %2 = vsyncpa [#allocation0], 0  ;;  %s61_s0 = inlined_call_operand.hbm [shape: c64[2,4,8,9], index: 0, kind: input, shape index: {}]   ;;  %s62_s1 = inlined_call_operand.vmem [shape: f32[2,4,8,9], index: 1, kind: output, shape index: {}]  }
   0x1   :  { %s3_s8 = sshll.u32 %s62_s1, 4  ;;  %s9_s11 = scalar_lea.hbm %s61_s0, 1024  ;;  %s4_s8 = int_to_ptr.vmem [resolvable:$true] %s3_s8 }
   0x2   :  { %p10_p0 = scmp.ne.s32.totalorder %s61_s0, %s9_s11  ;;  %s11_s16 = scalar_lea.hbm %s61_s0, 2048 }
   0x3   :  { %p12_p1 = scmp.lt.u32.totalorder %s11_s16, %s9_s11  ;;  %p13_p2 = scmp.lt.u32.totalorder %s9_s11, %s61_s0 }
   0x5   :  { %p14_p3 = por %p13_p2, %p12_p1 }
   0x7   :  { %p15_p4 = pnand %p14_p3, %p10_p0 }
   0x9   :  { %18 = shalt.err (!%p15_p4)  }
   0xa   :  { %s19_s1 = scalar_lea.vmem %s4_s8, 1024  ;;  %p24_p6 = scmp.lt.s32.totalorder %s4_s8, %s4_s8 }
   0xb   :  { %p20_p5 = scmp.ne.s32.totalorder %s4_s8, %s19_s1  ;;  %p25_p7 = scmp.lt.s32.totalorder %s19_s1, %s19_s1 }
   0xd   :  { %p26_p8 = por %p25_p7, %p24_p6 }
   0xf   :  { %p27_p9 = pnand %p26_p8, %p20_p5 }
  0x11   :  { %30 = shalt.err (!%p27_p9)  }
  0x12   :  { %6 = dma.hbm_to_vmem [thread:$0]  %s61_s0, 1024, %s4_s8, [#allocation0] }
  0x13   :  { %31 = dma.done.wait [#allocation0], 1024  }
  0x14   :  { %32 = vsyncadd [#allocation0], 4294966272 }
  0x15   :  { %8 = vsyncpa [#allocation0], 1 }

// kernel: custom-call.1
= control target key start
LH: loop header
LB: loop body
LE: loop exit
PB: predicated region body
PF: predicated region fallthrough
CT: control target
= control target key end

     0   :  { %s59_s0 = inlined_call_operand.hbm [shape: c64[2,4,8,9], index: 0, kind: input, shape index: {}]   ;;  %s60_s1 = inlined_call_operand.vmem [shape: f32[2,4,8,9], index: 1, kind: output, shape index: {}]  }
   0x1   :  { %s2_s8 = scalar_lea.hbm %s59_s0, 1024 }
   0x2   :  { %3 = vsyncpa [#allocation0], 0  ;;  %s4_s11 = sshll.u32 %s60_s1, 4  ;;  %s34_s14 = scalar_lea.hbm %s59_s0, 2048  ;;  %s5_s11 = int_to_ptr.vmem [resolvable:$true] %s4_s11 }
   0x3   :  { %p11_p0 = scmp.ne.s32.totalorder %s2_s8, %s34_s14  ;;  %p13_p1 = scmp.lt.u32.totalorder %s2_s8, %s59_s0 }
   0x4   :  { %p14_p2 = scmp.lt.u32.totalorder %s34_s14, %s34_s14  ;;  %p16_p4 = scmp.lt.u32.totalorder %s34_s14, %s2_s8 }
   0x6   :  { %p15_p3 = por %p14_p2, %p13_p1 }
   0x8   :  { %p17_p5 = por %p16_p4, %p15_p3 }
   0xa   :  { %p18_p6 = pnand %p17_p5, %p11_p0 }
   0xc   :  { %21 = shalt.err (!%p18_p6)  }
   0xd   :  { %s22_s17 = scalar_lea.vmem %s5_s11, 1024  ;;  %p27_p8 = scmp.lt.s32.totalorder %s5_s11, %s5_s11 }
   0xe   :  { %p23_p7 = scmp.ne.s32.totalorder %s5_s11, %s22_s17  ;;  %p28_p9 = scmp.lt.s32.totalorder %s22_s17, %s22_s17 }
  0x10   :  { %p29_p10 = por %p28_p9, %p27_p8 }
  0x12   :  { %p30_p11 = pnand %p29_p10, %p23_p7 }
  0x14   :  { %33 = shalt.err (!%p30_p11)  }
  0x15   :  { %7 = dma.hbm_to_vmem [thread:$0]  %s2_s8, 1024, %s5_s11, [#allocation0] }
  0x16   :  { %35 = dma.done.wait [#allocation0], 1024  }
  0x17   :  { %36 = vsyncadd [#allocation0], 4294966272 }
  0x18   :  { %9 = vsyncpa [#allocation0], 1 }

// kernel: _irfft1_matmul.1
= control target key start
LH: loop header
LB: loop body
LE: loop exit
PB: predicated region body
PF: predicated region fallthrough
CT: control target
= control target key end

     0   :  { %vm23_vm0 = vcmask 146432   ;;  %vm48_vm1 = vcmask 1041408   ;;  %s334_s0 = inlined_call_operand.vmem [shape: f32[64,18], index: 0, kind: input, shape index: {}]   ;;  %s335_s1 = inlined_call_operand.vmem [shape: f32[18,16], index: 1, kind: input, shape index: {}]   ;;  %s336_s2 = inlined_call_operand.hbm [shape: f32[64,16], index: 2, kind: output, shape index: {}]  }
   0x1   :  { %v20_v0 = vld [vmem:[%s335_s1] sm:$0xff]  ;;  %v21_v1 = vld [vmem:[%s335_s1 + $0x8] sm:$0xff]  ;;  %v22_v5 = vld [vmem:[%s335_s1 + $0x10] sm:$0x3] }
   0x2   :  { %v220_v2 = vpack.c.bf16 %v21_v1, %v20_v0  ;;  %v12_v3 = vld [vmem:[%s334_s0] sm:$0xff] }
   0x3   :  { %v16_v4 = vld [vmem:[%s334_s0 + $0x20] sm:$0xff]  ;;  %208 = vmatprep.mubr.msk.f32.mxu0 %vm23_vm0, %v12_v3 }
   0x4   :  { %214 = vmatprep.mubr.msk.f32.mxu1 %vm23_vm0, %v16_v4  ;;  %221 = vmatprep.subr.bf16.mxu0 %v220_v2 }
   0x5   :  { %224 = vmatprep.subr.bf16.mxu1 %v220_v2 }
   0x6   :  { %7 = vsyncpa [#allocation3], 0  ;;  %223 = vmatpush3.bf16.msra.mxu0 %v220_v2  ;;  %226 = vmatpush3.bf16.msra.mxu1 %v220_v2  ;;  %v13_v6 = vld [vmem:[%s334_s0 + $0x8] sm:$0xff]  ;;  %v14_v8 = vld [vmem:[%s334_s0 + $0x10] sm:$0xff]  ;;  %vm157_vm2 = vcmask 130048   ;;  %s255_s30 = smov [#allocation2]  }
   0x7   :  { %206 = vmatprep.subr.msk.mxu0 %vm48_vm1, %v22_v5  ;;  %225 = vmatprep.subr.msk.mxu1 %vm48_vm1, %v22_v5  ;;  %v17_v7 = vld [vmem:[%s334_s0 + $0x28] sm:$0xff]  ;;  %v18_v9 = vld [vmem:[%s334_s0 + $0x30] sm:$0xff]  ;;  %v15_v10 = vld [vmem:[%s334_s0 + $0x18] sm:$0xff]  ;;  %s171_s3 = sshll.u32 %s255_s30, 4  ;;  %s172_s3 = int_to_ptr.vmem [resolvable:$true] %s171_s3 }
   0x8   :  { %v19_v11 = vld [vmem:[%s334_s0 + $0x38] sm:$0xff]  ;;  %s231_s0 = scalar_lea.vmem %s172_s3, 1024  ;;  %p236_p1 = scmp.lt.s32.totalorder %s172_s3, %s172_s3 }
   0x9   :  { %p232_p0 = scmp.ne.s32.totalorder %s172_s3, %s231_s0  ;;  %p237_p2 = scmp.lt.s32.totalorder %s231_s0, %s231_s0 }
   0xa   :  { %207 = vmatpush3.msk.msra.mxu0 %vm48_vm1, %v22_v5  ;;  %227 = vmatpush3.msk.msra.mxu1 %vm48_vm1, %v22_v5 }
   0xb   :  { %209 = vmatmul.mubr.msk.f32.vlgmr.msra.gmra.mrb[0].mxu0 %vm23_vm0, %v13_v6  ;;  %215 = vmatmul.mubr.msk.f32.vlgmr.msra.gmra.mrb[0].mxu1 %vm23_vm0, %v17_v7  ;;  %p238_p3 = por %p237_p2, %p236_p1 }
   0xc   :  { %211 = vmatprep.mubr.msk.f32.mxu0 %vm23_vm0, %v14_v8  ;;  %217 = vmatprep.mubr.msk.f32.mxu1 %vm23_vm0, %v18_v9 }
   0xd   :  { %p239_p4 = pnand %p238_p3, %p232_p0 }
   0xf   :  { %212 = vmatmul.mubr.msk.f32.gmra.mrb[2].mxu0 %vm23_vm0, %v15_v10  ;;  %218 = vmatmul.mubr.msk.f32.gmra.mrb[2].mxu1 %vm23_vm0, %v19_v11 }
  0xde   :  { %v210_v12 = vpop.f32.mrb[0].mxu0  ;;  %v216_v13 = vpop.f32.mrb[0].mxu1 }
  0xdf   :  { %159 = vst.msk [vmem:[#allocation2 + $0x8] sm:$0xff] %vm157_vm2, %v210_v12  ;;  %163 = vst.msk [vmem:[#allocation2 + $0x28] sm:$0xff] %vm157_vm2, %v216_v13  ;;  %v118_v14 = vpop.f32.mrb[1].mxu0  ;;  %v138_v15 = vpop.f32.mrb[1].mxu1 }
  0xe0   :  { %158 = vst.msk [vmem:[#allocation2] sm:$0xff] %vm157_vm2, %v118_v14  ;;  %162 = vst.msk [vmem:[#allocation2 + $0x20] sm:$0xff] %vm157_vm2, %v138_v15 }
  0xe2   :  { %v213_v16 = vpop.f32.mrb[2].mxu0  ;;  %v219_v17 = vpop.f32.mrb[2].mxu1 }
  0xe3   :  { %161 = vst.msk [vmem:[#allocation2 + $0x18] sm:$0xff] %vm157_vm2, %v213_v16  ;;  %165 = vst.msk [vmem:[#allocation2 + $0x38] sm:$0xff] %vm157_vm2, %v219_v17  ;;  %v128_v18 = vpop.f32.mrb[3].mxu0  ;;  %v148_v19 = vpop.f32.mrb[3].mxu1 }
  0xe4   :  { %160 = vst.msk [vmem:[#allocation2 + $0x10] sm:$0xff] %vm157_vm2, %v128_v18  ;;  %164 = vst.msk [vmem:[#allocation2 + $0x30] sm:$0xff] %vm157_vm2, %v148_v19 }
  0xe5   :  { %242 = shalt.err (!%p239_p4)
}
  0xe6   :  { %s243_s6 = scalar_lea.hbm %s336_s2, 1024 }
  0xe7   :  { %p244_p5 = scmp.ne.s32.totalorder %s336_s2, %s243_s6  ;;  %p247_p6 = scmp.lt.u32.totalorder %s243_s6, %s336_s2 }
  0xe9   :  { %p249_p7 = pnand %p247_p6, %p244_p5 }
  0xeb   :  { %252 = shalt.err (!%p249_p7)
}
  0xec   :  { %s256_s11 = smov 128   ;;  %s257_s12 = smov 8  }
  0xed   :  { %177 = dma.vmem_to_hbm [thread:$0]  %s172_s3, 1024, %s336_s2, [#allocation3], %s256_s11, %s256_s11, %s257_s12  }
  0xee   :  { %253 = dma.done.wait [#allocation3], 1024  }
  0xef   :  { %254 = vsyncadd [#allocation3], 4294966272 }
  0xf0   :  { %181 = vsyncpa [#allocation3], 1 }

</bundles_post_ra>
